<compile_context>
chip_gen: v6e
topology: v6e:2x2x1
jax: 0.10.0
libtpu: 0.0.40
codegen_flags: <defaults>
</compile_context>

<pallas_src>
import functools
import math

import jax
import jax.numpy as jnp
from jax.experimental import pallas as pl
from jax.experimental.pallas import tpu as pltpu


def positional_encoding(length: int, depth: int) -> jnp.ndarray:
    """Pure-JAX parameter setup (matches the PyTorch helper exactly:
    concat([sin, cos], dim=-1), NOT interleaved)."""
    half = depth // 2
    positions = jnp.arange(length, dtype=jnp.float32)[:, None]          # (L, 1)
    depths = jnp.arange(half, dtype=jnp.float32)[None, :] / half        # (1, half)
    angle_rates = 1.0 / (10000.0 ** depths)                             # (1, half)
    angle_rads = positions * angle_rates                                # (L, half)
    return jnp.concatenate([jnp.sin(angle_rads), jnp.cos(angle_rads)], axis=-1)


def _pos_enc_kernel(x_ref, pe_ref, o_ref, *, scale):
    # x_ref/o_ref: (TB, TF) lane-dense block; pe_ref: (1, TF) shared slab.
    # Pure VPU elementwise: scale + broadcast-add over the batch rows.
    o_ref[...] = x_ref[...] * scale + pe_ref[...]


def _pick_tf(F: int, itemsize: int, target_bytes: int = 1 << 20) -> int:
    """Lane-dense tile along the flattened (L*D) feature axis."""
    if F * itemsize <= target_bytes or F % 128 != 0:
        # Small row, or not 128-divisible: use the full row (always legal —
        # a block dim equal to the full array dim satisfies the (8,128) rule).
        return F
    tf = min(max(128, (target_bytes // itemsize) // 128 * 128), F)
    while F % tf != 0:          # prefer a divisor to avoid ragged edge blocks
        tf -= 128
    return tf


def _pick_tb(B: int, tf: int, itemsize: int, target_bytes: int = 1 << 20) -> int:
    """Merge batch rows into one block until ~target_bytes per block."""
    max_tb = max(1, target_bytes // (tf * itemsize))
    if max_tb >= B:
        return B                                   # whole batch in one block
    return min(B, max(8, (max_tb // 8) * 8))       # multiple of 8 or full B


def positional_encoder_forward(x: jnp.ndarray, pos_encoding: jnp.ndarray,
                               d_model: int) -> jnp.ndarray:
    B, L, D = x.shape
    F = L * D
    scale = math.sqrt(d_model)

    # Lane-dense flattening + dtype match for pe (plain-JAX glue, free).
    pe = pos_encoding[:L, :].astype(x.dtype).reshape(1, F)
    x2 = x.reshape(B, F)

    itemsize = jnp.dtype(x.dtype).itemsize
    tf = _pick_tf(F, itemsize)
    tb = _pick_tb(B, tf, itemsize)
    nf = pl.cdiv(F, tf)
    nb = pl.cdiv(B, tb)

    out = pl.pallas_call(
        functools.partial(_pos_enc_kernel, scale=scale),
        out_shape=jax.ShapeDtypeStruct((B, F), x.dtype),
        grid_spec=pltpu.PrefetchScalarGridSpec(
            num_scalar_prefetch=0,
            # Feature-block axis OUTER, batch-block axis INNER so the pe block
            # index is constant across batch iterations (pe DMA'd once per
            # feature block, amortized over the whole batch).
            grid=(nf, nb),
            in_specs=[
                pl.BlockSpec((tb, tf), lambda f, b: (b, f)),   # x
                pl.BlockSpec((1, tf), lambda f, b: (0, f)),    # pe (batch-invariant)
            ],
            out_specs=pl.BlockSpec((tb, tf), lambda f, b: (b, f)),
        ),
        compiler_params=pltpu.CompilerParams(
            dimension_semantics=("parallel", "parallel")),
    )(x2, pe)

    return out.reshape(B, L, D)


if __name__ == "__main__":
    # Small shapes consistent with the module: batch=2, seq=8, d_model=32
    B, L, D = 2, 8, 32
    MAX_LEN = 2048

    key = jax.random.PRNGKey(0)
    x = jax.random.normal(key, (B, L, D), dtype=jnp.float32)

    pe_table = positional_encoding(MAX_LEN, D)     # (2048, 32), deterministic

    out = positional_encoder_forward(x, pe_table, D)
    out = jax.block_until_ready(out)

    # quick sanity check against pure-JAX reference
    ref = x * math.sqrt(D) + pe_table[:L, :][None, :, :]
    assert jnp.allclose(out, ref, atol=1e-5, rtol=1e-5)

    print("KERNEL_OK")
</pallas_src>

<mosaic_0001>
module attributes {stable_mosaic.version = 11 : i64} {
  func.func @_pos_enc_kernel(%arg0: i32, %arg1: i32, %arg2: memref<2x256xf32, #tpu.memory_space<vmem>>, %arg3: memref<1x256xf32, #tpu.memory_space<vmem>>, %arg4: memref<2x256xf32, #tpu.memory_space<vmem>>) attributes {dimension_semantics = [#tpu.dimension_semantics<parallel>, #tpu.dimension_semantics<parallel>], iteration_bounds = array<i64: 1, 1>, scalar_prefetch = 0 : i64, scratch_operands = 0 : i64, tpu.core_type = #tpu.core_type<tc>, window_params = [{transform_indices = @transform_0, window_bounds = array<i64: 2, 256>}, {transform_indices = @transform_1, window_bounds = array<i64: 1, 256>}, {transform_indices = @transform_2, window_bounds = array<i64: 2, 256>}]} {
    %c0 = arith.constant 0 : index
    %c0_0 = arith.constant 0 : index
    %0 = vector.load %arg2[%c0, %c0_0] : memref<2x256xf32, #tpu.memory_space<vmem>>, vector<2x256xf32>
    %cst = arith.constant 5.65685415 : f32
    %1 = vector.broadcast %cst : f32 to vector<2x256xf32>
    %2 = arith.mulf %0, %1 : vector<2x256xf32>
    %c0_1 = arith.constant 0 : index
    %c0_2 = arith.constant 0 : index
    %3 = vector.load %arg3[%c0_1, %c0_2] : memref<1x256xf32, #tpu.memory_space<vmem>>, vector<1x256xf32>
    %4 = vector.broadcast %3 : vector<1x256xf32> to vector<2x256xf32>
    %5 = arith.addf %2, %4 : vector<2x256xf32>
    %c0_3 = arith.constant 0 : index
    %c0_4 = arith.constant 0 : index
    %6 = vector.load %arg4[%c0_3, %c0_4] : memref<2x256xf32, #tpu.memory_space<vmem>>, vector<2x256xf32>
    tpu.vector_store %arg4[%c0_3, %c0_4], %5 {strides = array<i32>} : memref<2x256xf32, #tpu.memory_space<vmem>>, vector<2x256xf32>,
    return
  }
  func.func @transform_0(%arg0: i32, %arg1: i32) -> (i32, i32) {
    %c0_i32 = arith.constant 0 : i32
    return %arg1, %arg0 : i32, i32
  }
  func.func @transform_1(%arg0: i32, %arg1: i32) -> (i32, i32) {
    %c0_i32 = arith.constant 0 : i32
    %c0_i32_0 = arith.constant 0 : i32
    return %c0_i32, %arg0 : i32, i32
  }
  func.func @transform_2(%arg0: i32, %arg1: i32) -> (i32, i32) {
    %c0_i32 = arith.constant 0 : i32
    return %arg1, %arg0 : i32, i32
  }
}

</mosaic_0001>

<bundles_post_ra>
// kernel: tpu_custom_call.1
= control target key start
LH: loop header
LB: loop body
LE: loop exit
PB: predicated region body
PF: predicated region fallthrough
CT: control target
= control target key end

     0   :  { %7 = vsyncpa [#allocation3], 0  ;;  %s173_s0 = inlined_call_operand.hbm [shape: f32[2,256], index: 0, kind: input, shape index: {}]   ;;  %s174_s1 = inlined_call_operand.hbm [shape: f32[1,256], index: 1, kind: input, shape index: {}]   ;;  %s175_s2 = inlined_call_operand.hbm [shape: f32[2,256], index: 2, kind: output, shape index: {}]  }
   0x1   :  { %8 = vsyncpa [#allocation6], 0 }
   0x2   :  { %9 = vsyncpa [#allocation4], 0  ;;  %s145_s9 = smov [#allocation2]   ;;  %s146_s11 = smov [#allocation5]  }
   0x3   :  { %s16_s10 = sshll.u32 %s145_s9, 4  ;;  %s26_s12 = sshll.u32 %s146_s11, 4  ;;  %s17_s10 = int_to_ptr.vmem [resolvable:$true] %s16_s10  ;;  %s27_s12 = int_to_ptr.vmem [resolvable:$true] %s26_s12 }
   0x4   :  { %s87_s13 = scalar_lea.vmem %s17_s10, 64  ;;  %p92_p1 = scmp.lt.s32.totalorder %s17_s10, %s17_s10 }
   0x5   :  { %p88_p0 = scmp.ne.s32.totalorder %s17_s10, %s87_s13  ;;  %p93_p2 = scmp.lt.s32.totalorder %s87_s13, %s87_s13 }
   0x7   :  { %p94_p3 = por %p93_p2, %p92_p1 }
   0x9   :  { %p95_p4 = pnand %p94_p3, %p88_p0 }
   0xb   :  { %98 = shalt.err (!%p95_p4)
}
   0xc   :  { %19 = dma.hbm_to_vmem [thread:$0]  %s173_s0, 64, %s17_s10, [#allocation3]  }
   0xd   :  { %s107_s16 = scalar_lea.vmem %s27_s12, 32  ;;  %p112_p6 = scmp.lt.s32.totalorder %s27_s12, %s27_s12 }
   0xe   :  { %p108_p5 = scmp.ne.s32.totalorder %s27_s12, %s107_s16  ;;  %p113_p7 = scmp.lt.s32.totalorder %s107_s16, %s107_s16 }
  0x10   :  { %p114_p8 = por %p113_p7, %p112_p6 }
  0x12   :  { %p115_p9 = pnand %p114_p8, %p108_p5 }
  0x14   :  { %118 = shalt.err (!%p115_p9)
}
  0x15   :  { %29 = dma.hbm_to_vmem [thread:$0]  %s174_s1, 32, %s27_s12, [#allocation6]  }
  0x16   :  { %139 = dma.done.wait [#allocation3], 64  }
  0x17   :  { %140 = vsyncadd [#allocation3], 4294967232 }
  0x18   :  { %141 = dma.done.wait [#allocation6], 32  }
  0x19   :  { %142 = vsyncadd [#allocation6], 4294967264  ;;  %v40_v0 = vlaneseq  ;;  %v147_v1 = vmov 1983009808   ;;  %v36_v7 = vld [vmem:[#allocation2] sm:$0xf] }
  0x1a   :  { %v50_v2 = vunpack.c.l.s4 %v147_v1  ;;  %v38_v8 = vld [vmem:[#allocation5] sm:$0x3]  ;;  %v37_v12 = vmul.f32 5.656854, %v36_v7  ;;  %s148_s0 = smov [#allocation7]  }
  0x1b   :  { %v41_v3 = vshrl.u32 %v40_v0, 7  ;;  %s65_s1 = sshll.u32 %s148_s0, 4  ;;  %s66_s1 = int_to_ptr.vmem [resolvable:$true] %s65_s1 }
  0x1c   :  { %v51_v6 = vunpack.c.0.s8 %v50_v2  ;;  %s119_s19 = scalar_lea.vmem %s66_s1, 64  ;;  %p124_p11 = scmp.lt.s32.totalorder %s66_s1, %s66_s1 }
  0x1d   :  { %v42_v4 = vsub.s32 0, %v41_v3  ;;  %v46_v5 = vsub.s32 1, %v41_v3  ;;  %p120_p10 = scmp.ne.s32.totalorder %s66_s1, %s119_s19  ;;  %p125_p12 = scmp.lt.s32.totalorder %s119_s19, %s119_s19 }
  0x1e   :  { %v54_v11 = vsub.s32 %v51_v6, %v41_v3 }
  0x1f   :  { %v43_v9 = vrot.slane %v38_v8, %v42_v4  ;;  %v47_v10 = vrot.slane %v38_v8, %v46_v5  ;;  %p126_p13 = por %p125_p12, %p124_p11 }
  0x21   :  { %v48_v13 = vcombine.low %v43_v9, %v47_v10  ;;  %p127_p0 = pnand %p126_p13, %p120_p10 }
  0x23   :  { %v55_v14 = vrot.slane %v48_v13, %v54_v11 }
  0x25   :  { %v57_v15 = vadd.f32 %v55_v14, %v37_v12 }
  0x27   :  { %58 = vst [vmem:[#allocation7] sm:$0xf] %v57_v15 }
  0x28   :  { %130 = shalt.err (!%p127_p0)
}
  0x29   :  { %68 = dma.vmem_to_hbm [thread:$0]  %s66_s1, 64, %s175_s2, [#allocation4]  }
  0x2a   :  { %143 = dma.done.wait [#allocation4], 64  }
  0x2b   :  { %144 = vsyncadd [#allocation4], 4294967232 }
  0x2c   :  { %72 = vsyncpa [#allocation3], 1 }
  0x2d   :  { %73 = vsyncpa [#allocation6], 1 }
  0x2e   :  { %74 = vsyncpa [#allocation4], 1 }

</bundles_post_ra>
